<compile_context>
chip_gen: v5e
topology: v5e:2x2
jax: 0.10.0
libtpu: 0.0.40
codegen_flags: <defaults>
</compile_context>

<pallas_src>
import jax
import jax.numpy as jnp
from jax.experimental import pallas as pl
from jax.experimental.pallas import tpu as pltpu

_LANE = 128


def film_kernel(gb_ref, x_ref, o_ref):
    """One grid step == one (row-tile, T-tile) block.

    gb_ref: (tR, 2)   f32, column 0 = gamma, column 1 = beta (per flattened row)
    x_ref : (tR, tT)  input tile, (B*C_in) on sublanes, T on lanes
    o_ref : (tR, tT)
    """
    gamma = gb_ref[:, 0:1]                            # (tR, 1)
    beta = gb_ref[:, 1:2]                             # (tR, 1)
    x = x_ref[...].astype(jnp.float32)                # (tR, tT)
    o_ref[...] = (gamma * x + beta).astype(o_ref.dtype)


def _sublane_pack(itemsize):
    return {4: 8, 2: 16, 1: 32}.get(itemsize, 8)


def _target_block_bytes():
    # v7x (64 MiB VMEM / 3.2 TB/s HBM): bigger blocks amortize the fixed
    # per-grid-step overhead.  v5e/v6e (128 MiB VMEM): 2 MiB blocks already
    # sit near the HBM roofline and stay far from the 16 MiB scoped limit.
    try:
        vmem = pltpu.get_tpu_info().vmem_capacity_bytes
        if vmem <= 64 * 1024 * 1024:
            return 4 * 1024 * 1024
    except Exception:
        pass
    return 2 * 1024 * 1024


def _choose_tiles(R, T, itemsize, target_bytes):
    """Pick (tR, tT): tR multiple of the sublane pack, tT multiple of 128,
    block ~= target_bytes.  Small/unaligned dims fall back to the full dim
    (always legal) rather than one giant block on the other axis."""
    sub = _sublane_pack(itemsize)

    # Lane (T) tile.
    if T <= _LANE:
        tT = T
    else:
        budget_lanes = max(target_bytes // (sub * itemsize), _LANE)
        tT = min((T // _LANE) * _LANE, (budget_lanes // _LANE) * _LANE)
        tT = max(tT, _LANE)

    # Row (sublane) tile.
    if R <= sub:
        tR = R
    else:
        budget_rows = max(target_bytes // (tT * itemsize), sub)
        tR = min((R // sub) * sub, (budget_rows // sub) * sub, 1024)
        tR = max(tR, sub)
    return tR, tT


def film_layer(x, c, w, b, *, target_block_bytes=None, use_pallas=None,
               donate_x=False):
    """FiLM forward.

    x: (B, C_in, T)      -- PyTorch NCL layout (kept as-is, no transposes)
    c: (B, C_cond)
    w: (C_cond, 2*C_in)  -- transposed Conv1d weight, kernel dim squeezed
    b: (2*C_in,)
    returns (B, C_in, T) in x.dtype
    """
    B, C_in, T = x.shape
    R = B * C_in
    itemsize = jnp.dtype(x.dtype).itemsize

    # Hoisted gamma/beta: a tiny GEMM XLA handles fine (kept in f32).
    gb = (c.astype(jnp.float32) @ w.astype(jnp.float32)
          + b.astype(jnp.float32))                    # (B, 2*C_in)
    gamma = gb[:, :C_in]                              # (B, C_in)
    beta = gb[:, C_in:]                               # (B, C_in)

    if use_pallas is None:
        # Tiny problems: the fixed Pallas launch/per-step overhead dominates
        # and XLA fusion is faster.
        use_pallas = R * T * itemsize >= (1 << 19)    # 512 KiB
    if not use_pallas:
        return (gamma[:, :, None] * x.astype(jnp.float32)
                + beta[:, :, None]).astype(x.dtype)

    # Flatten (B, C_in) onto the sublane axis (contiguous reshape, no copy in
    # NCL layout); merge gamma/beta into one (R, 2) operand.
    x_flat = x.reshape(R, T)
    gb2 = jnp.stack([gamma, beta], axis=-1).reshape(R, 2)   # (R, 2) f32

    if target_block_bytes is None:
        target_block_bytes = _target_block_bytes()
    tR, tT = _choose_tiles(R, T, itemsize, target_block_bytes)
    grid = (pl.cdiv(R, tR), pl.cdiv(T, tT))           # T innermost: gb2 block
                                                      # is re-fetched only when
                                                      # the row tile changes.

    cost = pl.CostEstimate(
        flops=2 * R * T,
        transcendentals=0,
        bytes_accessed=2 * R * T * itemsize + R * 2 * 4)

    out_flat = pl.pallas_call(
        film_kernel,
        out_shape=jax.ShapeDtypeStruct((R, T), x.dtype),
        grid_spec=pltpu.PrefetchScalarGridSpec(
            num_scalar_prefetch=0,
            grid=grid,
            in_specs=[
                pl.BlockSpec((tR, 2), lambda ri, ti: (ri, 0)),      # gamma|beta
                pl.BlockSpec((tR, tT), lambda ri, ti: (ri, ti)),    # x tile
            ],
            out_specs=pl.BlockSpec((tR, tT), lambda ri, ti: (ri, ti)),
        ),
        compiler_params=pltpu.CompilerParams(
            dimension_semantics=("parallel", "parallel")),
        cost_estimate=cost,
        input_output_aliases=({1: 0} if donate_x else {}),
    )(gb2, x_flat)

    return out_flat.reshape(B, C_in, T)


if __name__ == "__main__":
    def reference(x, c, w, b):
        gb = c.astype(jnp.float32) @ w.astype(jnp.float32) + b.astype(jnp.float32)
        C_in = x.shape[1]
        gamma = gb[:, :C_in][:, :, None]
        beta = gb[:, C_in:][:, :, None]
        return (gamma * x.astype(jnp.float32) + beta).astype(x.dtype)

    key = jax.random.PRNGKey(0)
    configs = [
        # (B, C_in, C_cond, T, dtype)
        (2, 4, 8, 16, jnp.float32),      # tiny: full-array blocks
        (3, 5, 7, 200, jnp.float32),     # unaligned rows + T: masked tail blocks
        (2, 16, 8, 1024, jnp.bfloat16),  # packed sublanes, lane-dense 128x tiles
    ]
    for (B, C_in, C_cond, T, dtype) in configs:
        key, kx, kc, kw, kb = jax.random.split(key, 5)
        x = jax.random.normal(kx, (B, C_in, T), dtype=jnp.float32).astype(dtype)
        c = jax.random.normal(kc, (B, C_cond), dtype=jnp.float32)
        # Deterministic synthetic params mimicking nn.Conv1d(cond, 2*in, 1) init.
        bound = 1.0 / (C_cond ** 0.5)
        w = jax.random.uniform(kw, (C_cond, 2 * C_in), minval=-bound,
                               maxval=bound, dtype=jnp.float32)
        bias = jax.random.uniform(kb, (2 * C_in,), minval=-bound, maxval=bound,
                                  dtype=jnp.float32)

        out = jax.block_until_ready(film_layer(x, c, w, bias, use_pallas=True))
        ref = reference(x, c, w, bias)

        assert out.shape == ref.shape and out.dtype == ref.dtype
        tol = 1e-5 if dtype == jnp.float32 else 2e-2
        assert jnp.allclose(out.astype(jnp.float32), ref.astype(jnp.float32),
                            atol=tol, rtol=tol), \
            f"mismatch vs reference for config {(B, C_in, C_cond, T, dtype)}"

    print("KERNEL_OK")
</pallas_src>

<mosaic_0001>
module attributes {stable_mosaic.version = 11 : i64} {
  func.func @film_kernel(%arg0: i32, %arg1: i32, %arg2: memref<8x2xf32, #tpu.memory_space<vmem>>, %arg3: memref<8x16xf32, #tpu.memory_space<vmem>>, %arg4: memref<8x16xf32, #tpu.memory_space<vmem>>) attributes {dimension_semantics = [#tpu.dimension_semantics<parallel>, #tpu.dimension_semantics<parallel>], iteration_bounds = array<i64: 1, 1>, scalar_prefetch = 0 : i64, scratch_operands = 0 : i64, tpu.core_type = #tpu.core_type<tc>, window_params = [{transform_indices = @transform_0, window_bounds = array<i64: 8, 2>}, {transform_indices = @transform_1, window_bounds = array<i64: 8, 16>}, {transform_indices = @transform_2, window_bounds = array<i64: 8, 16>}]} {
    %c0 = arith.constant 0 : index
    %c0_0 = arith.constant 0 : index
    %0 = vector.load %arg2[%c0, %c0_0] : memref<8x2xf32, #tpu.memory_space<vmem>>, vector<8x1xf32>
    %c0_1 = arith.constant 0 : index
    %c1 = arith.constant 1 : index
    %1 = vector.load %arg2[%c0_1, %c1] : memref<8x2xf32, #tpu.memory_space<vmem>>, vector<8x1xf32>
    %c0_2 = arith.constant 0 : index
    %c0_3 = arith.constant 0 : index
    %2 = vector.load %arg3[%c0_2, %c0_3] : memref<8x16xf32, #tpu.memory_space<vmem>>, vector<8x16xf32>
    %3 = vector.broadcast %0 : vector<8x1xf32> to vector<8x16xf32>
    %4 = arith.mulf %3, %2 : vector<8x16xf32>
    %5 = vector.broadcast %1 : vector<8x1xf32> to vector<8x16xf32>
    %6 = arith.addf %4, %5 : vector<8x16xf32>
    %c0_4 = arith.constant 0 : index
    %c0_5 = arith.constant 0 : index
    %7 = vector.load %arg4[%c0_4, %c0_5] : memref<8x16xf32, #tpu.memory_space<vmem>>, vector<8x16xf32>
    tpu.vector_store %arg4[%c0_4, %c0_5], %6 {strides = array<i32>} : memref<8x16xf32, #tpu.memory_space<vmem>>, vector<8x16xf32>,
    return
  }
  func.func @transform_0(%arg0: i32, %arg1: i32) -> (i32, i32) {
    %c0_i32 = arith.constant 0 : i32
    %c0_i32_0 = arith.constant 0 : i32
    return %arg0, %c0_i32 : i32, i32
  }
  func.func @transform_1(%arg0: i32, %arg1: i32) -> (i32, i32) {
    %c0_i32 = arith.constant 0 : i32
    return %arg0, %arg1 : i32, i32
  }
  func.func @transform_2(%arg0: i32, %arg1: i32) -> (i32, i32) {
    %c0_i32 = arith.constant 0 : i32
    return %arg0, %arg1 : i32, i32
  }
}

</mosaic_0001>

<bundles_post_ra>
// kernel: tpu_custom_call.1
= control target key start
LH: loop header
LB: loop body
LE: loop exit
PB: predicated region body
PF: predicated region fallthrough
CT: control target
= control target key end

     0   :  { %s101_s0 = inlined_call_operand.vmem [shape: f32[8,2], index: 0, kind: input, shape index: {}]   ;;  %s102_s1 = inlined_call_operand.vmem [shape: f32[8,16], index: 1, kind: input, shape index: {}]   ;;  %s103_s2 = inlined_call_operand.hbm [shape: f32[8,16], index: 2, kind: output, shape index: {}]  }
   0x1   :  { %v12_v0 = vld [vmem:[%s101_s0] sm:$0xff] }
   0x2   :  { %7 = vsyncpa [#allocation3], 0  ;;  %v74_v1 = vmov 0   ;;  %v75_v2 = vmov 1   ;;  %v13_v4 = vld [vmem:[%s102_s1] sm:$0xff]  ;;  %s76_s13 = smov [#allocation2]  }
   0x3   :  { %46 = vset.pattern.permute.xlu0 %v74_v1  ;;  %s32_s14 = sshll.u32 %s76_s13, 4  ;;  %s34_s17 = sshll.u32 %s103_s2, 4  ;;  %vm25_vm0 = vcmask 130048   ;;  %s33_s14 = int_to_ptr.vmem [resolvable:$true] %s32_s14  ;;  %s35_s17 = int_to_ptr.hbm [resolvable:$true] %s34_s17 }
   0x4   :  { %16 = vperm.xlu0 %46, %v12_v0  }
   0xc   :  { %47 = vset.pattern.permute.xlu0 %v75_v2 }
   0xd   :  { %21 = vperm.xlu0 %47, %v12_v0  }
  0x76   :  { %v17_v3 = vpop.permute.xlu0 %16 }
  0x77   :  { %v19_v5 = vmul.f32 %v17_v3, %v13_v4 }
  0x7f   :  { %v22_v6 = vpop.permute.xlu0 %21 }
  0x80   :  { %v24_v7 = vadd.f32 %v22_v6, %v19_v5 }
  0x82   :  { %26 = vst.msk [vmem:[#allocation2] sm:$0xff] %vm25_vm0, %v24_v7 }
  0x83   :  { %37 = dma.vmem_to_hbm [thread:$0]  %s33_s14, 128, %s35_s17, [#allocation3]  }
  0x84   :  { %72 = dma.done.wait [#allocation3], 128  }
  0x85   :  { %73 = vsyncadd [#allocation3], 4294967168 }
  0x86   :  { %42 = vsyncpa [#allocation3], 1 }

</bundles_post_ra>
